<compile_context>
chip_gen: v7x
topology: tpu7x:2x2x1
jax: 0.10.0
libtpu: 0.0.40
codegen_flags: <defaults>
</compile_context>

<pallas_src>
import math
import functools

import jax
import jax.numpy as jnp
from jax.experimental import pallas as pl
from jax.experimental.pallas import tpu as pltpu


# ---------------------------------------------------------------------------
# Kernel
# ---------------------------------------------------------------------------
def _attention_kernel(x_ref, mask_ref, wqkv_ref, bqkv_ref, wo_ref, bo_ref,
                      out_ref, ctx_ref, *, head_block, head_dim, num_groups,
                      approx_recip):
    # x_ref:    (Bb, S, D)      compute dtype
    # mask_ref: (Bb, 1, S)      f32
    # wqkv_ref: (1, D, 3*W)     compute dtype, W = head_block*Dh
    #                           lanes = [Q heads of group | K heads | V heads]
    #                           (1/sqrt(Dh) already folded into the Q columns)
    # bqkv_ref: (1, 1, 3*W)     f32
    # wo_ref:   (G, W, D)       compute dtype (full W_o, group-major, resident)
    # bo_ref:   (1, D)          f32
    # out_ref:  (Bb, S, D)      out dtype, written ONCE per batch block
    # ctx_ref:  (G, Bb*S, W)    compute dtype VMEM scratch (resident)
    g = pl.program_id(1)
    Bb, S, D = x_ref.shape
    HB, Dh = head_block, head_dim
    W = HB * Dh
    cdt = x_ref.dtype

    x2 = x_ref[...].reshape(Bb * S, D)

    # Fused Q|K|V projection for this head group: one MXU matmul, f32 acc.
    qkv = jnp.dot(x2, wqkv_ref[0], preferred_element_type=jnp.float32)
    qkv = qkv + bqkv_ref[0]                                   # (Bb*S, 3W) f32

    # Additive mask, f32 (matches reference -1e6 * (1 - mask)).
    neg = 1000000.0 * (1.0 - mask_ref[...])                   # (Bb, 1, S)

    def head_slice(seg, hh):
        lo = seg * W + hh * Dh                                # static offsets
        return qkv[:, lo:lo + Dh].astype(cdt).reshape(Bb, S, Dh)

    # Per-head attention (static unroll over the heads of this group; the MXU
    # work is identical to a batched einsum and avoids sublane<->major
    # relayouts of Q/K/V).
    ctx_parts = []
    for hh in range(HB):
        qh = head_slice(0, hh)        # scale already folded into W_q / b_q
        kh = head_slice(1, hh)
        vh = head_slice(2, hh)

        # Scores without materializing K^T; mask & softmax stay in f32.
        s = jnp.einsum('bqd,bkd->bqk', qh, kh,
                       preferred_element_type=jnp.float32)    # (Bb, S, S)
        s = s - neg
        m = jnp.max(s, axis=-1, keepdims=True)
        e = jnp.exp(s - m)
        denom = jnp.sum(e, axis=-1, keepdims=True)            # (Bb, S, 1)
        # (eval mode: attention dropout is identity)

        ctx_h = jnp.einsum('bqk,bkd->bqd', e.astype(cdt), vh,
                           preferred_element_type=jnp.float32)  # (Bb, S, Dh)
        # Deferred softmax normalization: scale ctx (S*Dh elems/row) instead
        # of the (S,S) attention matrix; reciprocal runs on the EUP slot.
        ctx_h = ctx_h * pl.reciprocal(denom, approx=approx_recip)
        ctx_parts.append(ctx_h.astype(cdt))

    ctx = ctx_parts[0] if HB == 1 else jnp.concatenate(ctx_parts, axis=-1)
    ctx_ref[g] = ctx.reshape(Bb * S, W)       # combine_heads for this group

    # After the last head group: one output projection over the full H*Dh
    # context (chunked K = W matmuls, f32 accumulation) and a single store.
    @pl.when(g == num_groups - 1)
    def _final():
        acc = jnp.dot(ctx_ref[0], wo_ref[0],
                      preferred_element_type=jnp.float32)     # (Bb*S, D)
        for gg in range(1, num_groups):
            acc = acc + jnp.dot(ctx_ref[gg], wo_ref[gg],
                                preferred_element_type=jnp.float32)
        out = acc + bo_ref[...]
        out_ref[...] = out.reshape(Bb, S, D).astype(out_ref.dtype)


# ---------------------------------------------------------------------------
# Tiling heuristics
# ---------------------------------------------------------------------------
def _pick_head_block(num_head, head_dim, lane_target=256):
    """Heads per grid step: pack the fused QKV matmul toward `lane_target`
    lanes per segment (256 for v6e/v7x MXU; pass 128 for v5e)."""
    divisors = [d for d in range(1, num_head + 1) if num_head % d == 0]
    good = [d for d in divisors if d * head_dim <= lane_target]
    return max(good) if good else 1


def _vmem_capacity_bytes():
    try:
        return int(pltpu.get_tpu_info().vmem_capacity_bytes)
    except Exception:
        return 64 << 20        # conservative fallback (v7x per-core VMEM)


def _estimate_step_vmem(block_b, S, D, H, Dh, HB, cbytes, obytes):
    """Rough per-step VMEM footprint: double-buffered blocks + resident
    scratch + dominant f32 temporaries."""
    rows = block_b * S
    W = HB * Dh
    weights = (D * 3 * W * cbytes * 2 + 3 * W * 4 * 2
               + H * Dh * D * cbytes * 2 + D * 4 * 2)
    blocks = (rows * D * cbytes * 2            # X block (double-buffered)
              + block_b * S * 4 * 2            # mask block
              + rows * D * obytes * 2)         # out block
    scratch = (H // HB) * rows * W * cbytes    # resident ctx scratch
    temps = (rows * 3 * W * 4                  # qkv f32 result
             + rows * 3 * W * cbytes           # q/k/v casts
             + rows * W * (4 + cbytes)         # ctx f32 + cast
             + int(2.5 * block_b * S * S * 4)) # live (Bb,S,S) score/exp temps
    return weights + blocks + scratch + temps


def _pick_block_b(B, S, D, H, Dh, HB, cbytes, obytes, budget):
    """Largest divisor of B whose estimated footprint fits `budget`, targeting
    block_b*S <= 1024 rows and keeping >=2 batch steps (megacore) if B allows."""
    divisors = [d for d in range(1, B + 1) if B % d == 0]
    prefer = [d for d in divisors if B // d >= 2] or divisors
    fits = [d for d in prefer
            if _estimate_step_vmem(d, S, D, H, Dh, HB, cbytes, obytes) <= budget]
    if not fits:
        # TODO(synk): flash-style KV tiling when even block_b=1 blows the budget.
        return 1
    capped = [d for d in fits if d * S <= 1024]
    return max(capped) if capped else min(fits)


# ---------------------------------------------------------------------------
# Weight packing (one-off, outside the per-call path)
# ---------------------------------------------------------------------------
def prepare_attention_params(params, *, num_head, head_dim, head_block=None,
                             compute_dtype=jnp.bfloat16, mxu_lane_target=256):
    """Head-group-major repack of the projection weights; folds 1/sqrt(Dh)
    into W_q / b_q. Call once and reuse across forward calls."""
    wq, bq, wk, bk, wv, bv, wo, bo = params
    H, Dh = num_head, head_dim
    D = wq.shape[0]
    if head_block is None:
        head_block = _pick_head_block(H, Dh, mxu_lane_target)
    assert H % head_block == 0
    G = H // head_block
    W = head_block * Dh
    scale = 1.0 / math.sqrt(Dh)

    def w_groups(w):   # (D, H*Dh) -> (G, D, W)
        return jnp.transpose(w.reshape(D, G, W), (1, 0, 2))

    def b_groups(b):   # (1, H*Dh) -> (G, 1, W)
        return jnp.transpose(b.reshape(1, G, W), (1, 0, 2))

    wqkv = jnp.concatenate([w_groups(wq * scale), w_groups(wk), w_groups(wv)],
                           axis=-1)                                # (G, D, 3W)
    bqkv = jnp.concatenate([b_groups(bq * scale), b_groups(bk), b_groups(bv)],
                           axis=-1)                                # (G, 1, 3W)
    return {
        'wqkv': wqkv.astype(compute_dtype),
        'bqkv': bqkv.astype(jnp.float32),
        'wo': wo.reshape(G, W, D).astype(compute_dtype),           # (G, W, D)
        'bo': bo.astype(jnp.float32),                              # (1, D)
        'head_block': head_block,
        'compute_dtype': jnp.dtype(compute_dtype),
    }


# ---------------------------------------------------------------------------
# Forward wrapper
# ---------------------------------------------------------------------------
def attention_forward(x, mask, packed, *, num_head, head_dim,
                      block_b=None, out_dtype=jnp.float32):
    """x: (B, S, D), mask: (B, S) -> (B, S, D) in `out_dtype` (f32 by default
    to match the reference; bf16 halves HBM writeback if downstream accepts)."""
    B, S, D = x.shape
    H, Dh = num_head, head_dim
    HB = packed['head_block']
    G = H // HB
    W = HB * Dh
    cdt = packed['compute_dtype']
    cbytes = jnp.dtype(cdt).itemsize
    obytes = jnp.dtype(out_dtype).itemsize

    cap = _vmem_capacity_bytes()
    vmem_limit = int(cap * 0.78)     # raise the scoped-VMEM limit explicitly
    budget = int(cap * 0.65)         # tile-sizing budget (compiler headroom)
    if block_b is None:
        block_b = _pick_block_b(B, S, D, H, Dh, HB, cbytes, obytes, budget)
    assert B % block_b == 0

    grid = (B // block_b, G)
    kernel = functools.partial(
        _attention_kernel, head_block=HB, head_dim=Dh, num_groups=G,
        approx_recip=(jnp.dtype(cdt) != jnp.dtype(jnp.float32)))

    return pl.pallas_call(
        kernel,
        out_shape=jax.ShapeDtypeStruct((B, S, D), out_dtype),
        grid_spec=pltpu.PrefetchScalarGridSpec(
            num_scalar_prefetch=0,
            grid=grid,
            in_specs=[
                pl.BlockSpec((block_b, S, D), lambda b, g: (b, 0, 0)),   # X
                pl.BlockSpec((block_b, 1, S), lambda b, g: (b, 0, 0)),   # mask
                pl.BlockSpec((1, D, 3 * W), lambda b, g: (g, 0, 0)),     # W_q|k|v (group g)
                pl.BlockSpec((1, 1, 3 * W), lambda b, g: (g, 0, 0)),     # b_q|k|v (group g)
                pl.BlockSpec((G, W, D), lambda b, g: (0, 0, 0)),         # W_o (resident)
                pl.BlockSpec((1, D), lambda b, g: (0, 0)),               # b_o
            ],
            out_specs=pl.BlockSpec((block_b, S, D), lambda b, g: (b, 0, 0)),
            scratch_shapes=[pltpu.VMEM((G, block_b * S, W), cdt)],
        ),
        compiler_params=pltpu.CompilerParams(
            dimension_semantics=("parallel", "arbitrary"),
            vmem_limit_bytes=vmem_limit),
    )(x.astype(cdt), mask.reshape(B, 1, S).astype(jnp.float32),
      packed['wqkv'], packed['bqkv'], packed['wo'], packed['bo'])


# ---------------------------------------------------------------------------
# Plain-JAX reference (matches the PyTorch module, eval mode)
# ---------------------------------------------------------------------------
def _reference_forward(x, mask, params, *, num_head, head_dim):
    wq, bq, wk, bk, wv, bv, wo, bo = params
    B, S, D = x.shape

    def split_heads(t):
        t = t.reshape(B, S, num_head, head_dim)
        return jnp.transpose(t, (0, 2, 1, 3))     # (B, H, S, Dh)

    Q = split_heads(x @ wq + bq[0])
    K = split_heads(x @ wk + bk[0])
    V = split_heads(x @ wv + bv[0])

    dot = jnp.einsum('bhqd,bhkd->bhqk', Q, K) / math.sqrt(head_dim)
    dot = dot - 1000000.0 * (1.0 - mask[:, None, None, :])
    attn = jax.nn.softmax(dot, axis=-1)
    ctx = jnp.einsum('bhqk,bhkd->bhqd', attn, V)
    ctx = jnp.transpose(ctx, (0, 2, 1, 3)).reshape(B, S, num_head * head_dim)
    return ctx @ wo + bo[0]


if __name__ == "__main__":
    # Small config consistent with the module's forward.
    B, S = 2, 8
    dim, num_head, head_dim = 32, 2, 16
    HDh = num_head * head_dim

    key = jax.random.PRNGKey(0)
    ks = jax.random.split(key, 10)

    # Deterministic synthetic parameters (PyTorch Linear-style uniform init).
    def lin(kw, kb, fan_in, fan_out):
        bound = 1.0 / math.sqrt(fan_in)
        w = jax.random.uniform(kw, (fan_in, fan_out), jnp.float32, -bound, bound)
        b = jax.random.uniform(kb, (1, fan_out), jnp.float32, -bound, bound)
        return w, b

    wq, bq = lin(ks[0], ks[1], dim, HDh)
    wk, bk = lin(ks[2], ks[3], dim, HDh)
    wv, bv = lin(ks[4], ks[5], dim, HDh)
    wo, bo = lin(ks[6], ks[7], HDh, dim)
    params = (wq, bq, wk, bk, wv, bv, wo, bo)

    x = jax.random.normal(ks[8], (B, S, dim), jnp.float32)
    # Binary attention mask with a few padded positions.
    mask = (jax.random.uniform(ks[9], (B, S)) > 0.25).astype(jnp.float32)
    mask = mask.at[:, 0].set(1.0)  # ensure at least one valid position per row

    ref = _reference_forward(x, mask, params, num_head=num_head, head_dim=head_dim)

    # 1) f32 path, head_block forced to 1 (two head groups): exercises the
    #    cross-group ctx scratch + chunked final projection. Strict check.
    packed_g1 = prepare_attention_params(params, num_head=num_head,
                                         head_dim=head_dim, head_block=1,
                                         compute_dtype=jnp.float32)
    out1 = attention_forward(x, mask, packed_g1, num_head=num_head,
                             head_dim=head_dim)
    out1 = jax.block_until_ready(out1)
    assert out1.shape == (B, S, dim)
    assert jnp.allclose(out1, ref, atol=1e-4, rtol=1e-4), "f32 (G=2) mismatch"

    # 2) f32 path, default head grouping (all heads fused per step). Strict.
    packed_f32 = prepare_attention_params(params, num_head=num_head,
                                          head_dim=head_dim,
                                          compute_dtype=jnp.float32)
    out2 = attention_forward(x, mask, packed_f32, num_head=num_head,
                             head_dim=head_dim)
    out2 = jax.block_until_ready(out2)
    assert jnp.allclose(out2, ref, atol=1e-4, rtol=1e-4), "f32 (grouped) mismatch"

    # 3) bf16 MXU-operand path (f32 accumulation, f32 softmax), explicit
    #    block_b covering the full batch in one step. Loose check.
    packed_bf16 = prepare_attention_params(params, num_head=num_head,
                                           head_dim=head_dim,
                                           compute_dtype=jnp.bfloat16)
    out3 = attention_forward(x, mask, packed_bf16, num_head=num_head,
                             head_dim=head_dim, block_b=B)
    out3 = jax.block_until_ready(out3)
    assert out3.shape == (B, S, dim)
    assert jnp.allclose(out3, ref, atol=3e-2, rtol=3e-2), "bf16 mismatch"

    print("KERNEL_OK")
</pallas_src>

<mosaic_0001>
module attributes {stable_mosaic.version = 11 : i64} {
  func.func @_attention_kernel(%arg0: i32, %arg1: i32, %arg2: memref<1x8x32xf32, #tpu.memory_space<vmem>>, %arg3: memref<1x1x8xf32, #tpu.memory_space<vmem>>, %arg4: memref<1x32x48xf32, #tpu.memory_space<vmem>>, %arg5: memref<1x1x48xf32, #tpu.memory_space<vmem>>, %arg6: memref<2x16x32xf32, #tpu.memory_space<vmem>>, %arg7: memref<1x32xf32, #tpu.memory_space<vmem>>, %arg8: memref<1x8x32xf32, #tpu.memory_space<vmem>>, %arg9: memref<2x8x16xf32, #tpu.memory_space<vmem>>) attributes {dimension_semantics = [#tpu.dimension_semantics<parallel>, #tpu.dimension_semantics<arbitrary>], iteration_bounds = array<i64: 2, 2>, scalar_prefetch = 0 : i64, scratch_operands = 1 : i64, tpu.core_type = #tpu.core_type<tc>, window_params = [{transform_indices = @transform_0, window_bounds = array<i64: 1, 8, 32>}, {transform_indices = @transform_1, window_bounds = array<i64: 1, 1, 8>}, {transform_indices = @transform_2, window_bounds = array<i64: 1, 32, 48>}, {transform_indices = @transform_3, window_bounds = array<i64: 1, 1, 48>}, {pipeline_mode = #tpu.pipeline_mode<synchronous>, transform_indices = @transform_4, window_bounds = array<i64: 2, 16, 32>}, {pipeline_mode = #tpu.pipeline_mode<synchronous>, transform_indices = @transform_5, window_bounds = array<i64: 1, 32>}, {transform_indices = @transform_6, window_bounds = array<i64: 1, 8, 32>}]} {
    %c0 = arith.constant 0 : index
    %c0_0 = arith.constant 0 : index
    %c0_1 = arith.constant 0 : index
    %0 = vector.load %arg2[%c0, %c0_0, %c0_1] : memref<1x8x32xf32, #tpu.memory_space<vmem>>, vector<1x8x32xf32>
    %1 = vector.shape_cast %0 : vector<1x8x32xf32> to vector<8x32xf32>
    %c0_2 = arith.constant 0 : index
    %c0_3 = arith.constant 0 : index
    %c0_4 = arith.constant 0 : index
    %2 = vector.load %arg4[%c0_2, %c0_3, %c0_4] : memref<1x32x48xf32, #tpu.memory_space<vmem>>, vector<1x32x48xf32>
    %3 = vector.shape_cast %2 : vector<1x32x48xf32> to vector<32x48xf32>
    %cst = arith.constant dense<0.000000e+00> : vector<8x48xf32>
    %4 = tpu.matmul %1, %3, %cst {dimension_numbers = #tpu.dot_dimension_numbers<[1], [0], [0], [1], [0, 0, 1, 1], [], []>} : vector<8x32xf32>, vector<32x48xf32>, vector<8x48xf32> -> vector<8x48xf32>
    %c0_5 = arith.constant 0 : index
    %c0_6 = arith.constant 0 : index
    %c0_7 = arith.constant 0 : index
    %5 = vector.load %arg5[%c0_5, %c0_6, %c0_7] : memref<1x1x48xf32, #tpu.memory_space<vmem>>, vector<1x1x48xf32>
    %6 = vector.shape_cast %5 : vector<1x1x48xf32> to vector<1x48xf32>
    %7 = vector.broadcast %6 : vector<1x48xf32> to vector<8x48xf32>
    %8 = arith.addf %4, %7 : vector<8x48xf32>
    %c0_8 = arith.constant 0 : index
    %c0_9 = arith.constant 0 : index
    %c0_10 = arith.constant 0 : index
    %9 = vector.load %arg3[%c0_8, %c0_9, %c0_10] : memref<1x1x8xf32, #tpu.memory_space<vmem>>, vector<1x1x8xf32>
    %cst_11 = arith.constant 1.000000e+00 : f32
    %10 = vector.broadcast %cst_11 : f32 to vector<1x1x8xf32>
    %11 = arith.subf %10, %9 : vector<1x1x8xf32>
    %cst_12 = arith.constant 1.000000e+06 : f32
    %12 = vector.broadcast %cst_12 : f32 to vector<1x1x8xf32>
    %13 = arith.mulf %12, %11 : vector<1x1x8xf32>
    %14 = vector.extract_strided_slice %8 {offsets = [0, 0], sizes = [8, 16], strides = [1, 1]} : vector<8x48xf32> to vector<8x16xf32>
    %15 = vector.shape_cast %14 : vector<8x16xf32> to vector<1x8x16xf32>
    %16 = vector.extract_strided_slice %8 {offsets = [0, 16], sizes = [8, 16], strides = [1, 1]} : vector<8x48xf32> to vector<8x16xf32>
    %17 = vector.shape_cast %16 : vector<8x16xf32> to vector<1x8x16xf32>
    %18 = vector.extract_strided_slice %8 {offsets = [0, 32], sizes = [8, 16], strides = [1, 1]} : vector<8x48xf32> to vector<8x16xf32>
    %19 = vector.shape_cast %18 : vector<8x16xf32> to vector<1x8x16xf32>
    "tpu.trace_start"() <{level = 10 : i32, message = "bqd,bkd->bqk"}> : () -> ()
    %cst_13 = arith.constant dense<0.000000e+00> : vector<1x8x8xf32>
    %20 = tpu.matmul %15, %17, %cst_13 {dimension_numbers = #tpu.dot_dimension_numbers<[2], [2], [1], [1], [0, 0, 0, 1, 1, 1], [0], [0]>} : vector<1x8x16xf32>, vector<1x8x16xf32>, vector<1x8x8xf32> -> vector<1x8x8xf32>
    "tpu.trace_stop"() : () -> ()
    %21 = vector.broadcast %13 : vector<1x1x8xf32> to vector<1x8x8xf32>
    %22 = arith.subf %20, %21 : vector<1x8x8xf32>
    %cst_14 = arith.constant dense<0xFF800000> : vector<1x8xf32>
    %23 = vector.multi_reduction <maximumf>, %22, %cst_14 [2] : vector<1x8x8xf32> to vector<1x8xf32>
    %24 = vector.shape_cast %23 : vector<1x8xf32> to vector<1x8x1xf32>
    %25 = vector.broadcast %24 : vector<1x8x1xf32> to vector<1x8x8xf32>
    %26 = arith.subf %22, %25 : vector<1x8x8xf32>
    %27 = math.exp %26 : vector<1x8x8xf32>
    %cst_15 = arith.constant dense<0.000000e+00> : vector<1x8xf32>
    %28 = vector.multi_reduction <add>, %27, %cst_15 [2] : vector<1x8x8xf32> to vector<1x8xf32>
    %29 = vector.shape_cast %28 : vector<1x8xf32> to vector<1x8x1xf32>
    "tpu.trace_start"() <{level = 10 : i32, message = "bqk,bkd->bqd"}> : () -> ()
    %cst_16 = arith.constant dense<0.000000e+00> : vector<1x8x16xf32>
    %30 = tpu.matmul %27, %19, %cst_16 {dimension_numbers = #tpu.dot_dimension_numbers<[2], [1], [1], [2], [0, 0, 0, 1, 1, 2], [0], [0]>} : vector<1x8x8xf32>, vector<1x8x16xf32>, vector<1x8x16xf32> -> vector<1x8x16xf32>
    "tpu.trace_stop"() : () -> ()
    %31 = tpu.reciprocal %29 : vector<1x8x1xf32> -> vector<1x8x1xf32>
    %32 = vector.broadcast %31 : vector<1x8x1xf32> to vector<1x8x16xf32>
    %33 = arith.mulf %30, %32 : vector<1x8x16xf32>
    %34 = vector.shape_cast %33 : vector<1x8x16xf32> to vector<8x16xf32>
    %35 = arith.index_cast %arg1 : i32 to index
    %c0_17 = arith.constant 0 : index
    %c0_18 = arith.constant 0 : index
    %36 = vector.load %arg9[%35, %c0_17, %c0_18] : memref<2x8x16xf32, #tpu.memory_space<vmem>>, vector<1x8x16xf32>
    %37 = vector.shape_cast %36 : vector<1x8x16xf32> to vector<8x16xf32>
    %38 = vector.shape_cast %34 : vector<8x16xf32> to vector<1x8x16xf32>
    tpu.vector_store %arg9[%35, %c0_17, %c0_18], %38 {strides = array<i32>} : memref<2x8x16xf32, #tpu.memory_space<vmem>>, vector<1x8x16xf32>,
    %c1_i32 = arith.constant 1 : i32
    %39 = arith.cmpi eq, %arg1, %c1_i32 : i32
    %40 = arith.extui %39 : i1 to i32
    %c0_i32 = arith.constant 0 : i32
    %41 = arith.cmpi ne, %40, %c0_i32 : i32
    scf.if %41 {
      %c0_19 = arith.constant 0 : index
      %c0_20 = arith.constant 0 : index
      %c0_21 = arith.constant 0 : index
      %42 = vector.load %arg9[%c0_19, %c0_20, %c0_21] : memref<2x8x16xf32, #tpu.memory_space<vmem>>, vector<1x8x16xf32>
      %43 = vector.shape_cast %42 : vector<1x8x16xf32> to vector<8x16xf32>
      %c0_22 = arith.constant 0 : index
      %c0_23 = arith.constant 0 : index
      %c0_24 = arith.constant 0 : index
      %44 = vector.load %arg6[%c0_22, %c0_23, %c0_24] : memref<2x16x32xf32, #tpu.memory_space<vmem>>, vector<1x16x32xf32>
      %45 = vector.shape_cast %44 : vector<1x16x32xf32> to vector<16x32xf32>
      %cst_25 = arith.constant dense<0.000000e+00> : vector<8x32xf32>
      %46 = tpu.matmul %43, %45, %cst_25 {dimension_numbers = #tpu.dot_dimension_numbers<[1], [0], [0], [1], [0, 0, 1, 1], [], []>} : vector<8x16xf32>, vector<16x32xf32>, vector<8x32xf32> -> vector<8x32xf32>
      %c1 = arith.constant 1 : index
      %c0_26 = arith.constant 0 : index
      %c0_27 = arith.constant 0 : index
      %47 = vector.load %arg9[%c1, %c0_26, %c0_27] : memref<2x8x16xf32, #tpu.memory_space<vmem>>, vector<1x8x16xf32>
      %48 = vector.shape_cast %47 : vector<1x8x16xf32> to vector<8x16xf32>
      %c1_28 = arith.constant 1 : index
      %c0_29 = arith.constant 0 : index
      %c0_30 = arith.constant 0 : index
      %49 = vector.load %arg6[%c1_28, %c0_29, %c0_30] : memref<2x16x32xf32, #tpu.memory_space<vmem>>, vector<1x16x32xf32>
      %50 = vector.shape_cast %49 : vector<1x16x32xf32> to vector<16x32xf32>
      %cst_31 = arith.constant dense<0.000000e+00> : vector<8x32xf32>
      %51 = tpu.matmul %48, %50, %cst_31 {dimension_numbers = #tpu.dot_dimension_numbers<[1], [0], [0], [1], [0, 0, 1, 1], [], []>} : vector<8x16xf32>, vector<16x32xf32>, vector<8x32xf32> -> vector<8x32xf32>
      %52 = arith.addf %46, %51 : vector<8x32xf32>
      %c0_32 = arith.constant 0 : index
      %c0_33 = arith.constant 0 : index
      %53 = vector.load %arg7[%c0_32, %c0_33] : memref<1x32xf32, #tpu.memory_space<vmem>>, vector<1x32xf32>
      %54 = vector.broadcast %53 : vector<1x32xf32> to vector<8x32xf32>
      %55 = arith.addf %52, %54 : vector<8x32xf32>
      %56 = vector.shape_cast %55 : vector<8x32xf32> to vector<1x8x32xf32>
      %c0_34 = arith.constant 0 : index
      %c0_35 = arith.constant 0 : index
      %c0_36 = arith.constant 0 : index
      %57 = vector.load %arg8[%c0_34, %c0_35, %c0_36] : memref<1x8x32xf32, #tpu.memory_space<vmem>>, vector<1x8x32xf32>
      tpu.vector_store %arg8[%c0_34, %c0_35, %c0_36], %56 {strides = array<i32>} : memref<1x8x32xf32, #tpu.memory_space<vmem>>, vector<1x8x32xf32>,
    } else {
    }
    return
  }
  func.func @transform_0(%arg0: i32, %arg1: i32) -> (i32, i32, i32) {
    %c0_i32 = arith.constant 0 : i32
    %c0_i32_0 = arith.constant 0 : i32
    %c0_i32_1 = arith.constant 0 : i32
    return %arg0, %c0_i32, %c0_i32_0 : i32, i32, i32
  }
  func.func @transform_1(%arg0: i32, %arg1: i32) -> (i32, i32, i32) {
    %c0_i32 = arith.constant 0 : i32
    %c0_i32_0 = arith.constant 0 : i32
    %c0_i32_1 = arith.constant 0 : i32
    return %arg0, %c0_i32, %c0_i32_0 : i32, i32, i32
  }
  func.func @transform_2(%arg0: i32, %arg1: i32) -> (i32, i32, i32) {
    %c0_i32 = arith.constant 0 : i32
    %c0_i32_0 = arith.constant 0 : i32
    %c0_i32_1 = arith.constant 0 : i32
    return %arg1, %c0_i32, %c0_i32_0 : i32, i32, i32
  }
  func.func @transform_3(%arg0: i32, %arg1: i32) -> (i32, i32, i32) {
    %c0_i32 = arith.constant 0 : i32
    %c0_i32_0 = arith.constant 0 : i32
    %c0_i32_1 = arith.constant 0 : i32
    return %arg1, %c0_i32, %c0_i32_0 : i32, i32, i32
  }
  func.func @transform_4(%arg0: i32, %arg1: i32) -> (i32, i32, i32) {
    %c0_i32 = arith.constant 0 : i32
    %c0_i32_0 = arith.constant 0 : i32
    %c0_i32_1 = arith.constant 0 : i32
    %c0_i32_2 = arith.constant 0 : i32
    return %c0_i32, %c0_i32_0, %c0_i32_1 : i32, i32, i32
  }
  func.func @transform_5(%arg0: i32, %arg1: i32) -> (i32, i32) {
    %c0_i32 = arith.constant 0 : i32
    %c0_i32_0 = arith.constant 0 : i32
    %c0_i32_1 = arith.constant 0 : i32
    return %c0_i32, %c0_i32_0 : i32, i32
  }
  func.func @transform_6(%arg0: i32, %arg1: i32) -> (i32, i32, i32) {
    %c0_i32 = arith.constant 0 : i32
    %c0_i32_0 = arith.constant 0 : i32
    %c0_i32_1 = arith.constant 0 : i32
    return %arg0, %c0_i32, %c0_i32_0 : i32, i32, i32
  }
}

</mosaic_0001>

<bundles_post_ra>
// kernel: tpu_custom_call.1
= control target key start
LH: loop header
LB: loop body
LE: loop exit
PB: predicated region body
PF: predicated region fallthrough
CT: control target
= control target key end

     0   :  { %s1801_s0 = inlined_call_operand.hbm [shape: f32[2,8,32], index: 0, kind: input, shape index: {}]   ;;  %s1802_s1 = inlined_call_operand.vmem [shape: f32[2,1,8], index: 1, kind: input, shape index: {}]   ;;  %s1803_s2 = inlined_call_operand.hbm [shape: f32[2,32,48], index: 2, kind: input, shape index: {}]   ;;  %s1804_s3 = inlined_call_operand.vmem [shape: f32[2,1,48], index: 3, kind: input, shape index: {}]   ;;  %s1805_s4 = inlined_call_operand.hbm [shape: f32[2,16,32], index: 4, kind: input, shape index: {}]   ;;  %s1806_s5 = inlined_call_operand.vmem [shape: f32[1,32], index: 5, kind: input, shape index: {}]   ;;  %s1807_s6 = inlined_call_operand.hbm [shape: f32[2,8,32], index: 6, kind: output, shape index: {}]  }
   0x1   :  { %1820 = sst [smem:[#allocation20_spill]] %s1801_s0 }
   0x2   :  { %1821 = sst [smem:[#allocation21_spill]] %s1805_s4 }
   0x3   :  { %1822 = sst [smem:[#allocation22_spill]] %s1806_s5 }
   0x4   :  { %1823 = sst [smem:[#allocation23_spill]] %s1807_s6 }
   0x5   :  { %11 = vsyncpa [#allocation4], 0 }
   0x6   :  { %13 = vsyncpa [#allocation4 + $0x1], 0 }
   0x7   :  { %14 = vsyncpa [#allocation7], 0 }
   0x8   :  { %16 = vsyncpa [#allocation7 + $0x1], 0 }
   0x9   :  { %17 = vsyncpa [#allocation5], 0 }
   0xa   :  { %19 = vsyncpa [#allocation5 + $0x1], 0  ;;  %s1433_s21 = smov 0   ;;  %s1435_s22 = smov 0  }
   0xb   :  { %s1437_s23 = smov 0   ;;  %s1439_s24 = smov 0  }
   0xc   :  { %s1441_s25 = smov 0   ;;  %s1443_s26 = smov 0  }
   0xd   :  { %s1445_s27 = smov 0   ;;  %s1447_s28 = smov 0  }
   0xe   :  { %s1449_s29 = smov 0   ;;  %s1451_s30 = smov 0  }
   0xf   :  { %s1453_s7 = smov 0  }
  0x10 LB: > { %1824 = sst [smem:[#allocation14_spill]] %s1362_s26  ;;  %s1487_s8 = sadd.s32 4294967295, %s1382_s7   ;;  %s1382_s7 = sphi %s1453_s7, %s25_s7   ;;  %s1378_s30 = sphi %s1451_s30, %s1860_s30   ;;  %s1374_s29 = sphi %s1449_s29, %s1867_s29   ;;  %s1370_s28 = sphi %s1447_s28, %s1858_s28   ;;  %s1366_s27 = sphi %s1445_s27, %s1866_s27   ;;  %s1362_s26 = sphi %s1443_s26, %s1857_s26   ;;  %s1358_s25 = sphi %s1441_s25, %s1865_s25   ;;  %s1354_s24 = sphi %s1439_s24, %s1864_s24   ;;  %s1350_s23 = sphi %s1437_s23, %s1863_s23   ;;  %s1346_s22 = sphi %s1435_s22, %s1862_s22   ;;  %s1342_s21 = sphi %s1433_s21, %s1861_s21  }
  0x11   : > { %1825 = sst [smem:[#allocation15_spill]] %s1378_s30  ;;  %p109_p0 = scmp.ne.s32.totalorder %s1346_s22, %s1342_s21 }
  0x12   : > { %p1808_p1 = scmp.eq.s32.totalorder %s1487_s8, 0  ;;  %p942_p2 = scmp.ge.s32.totalorder %s1382_s7, 1 }
  0x13   : > { %p214_p3 = scmp.lt.s32.totalorder %s1382_s7, 5  ;;  %s1384_s11 = smov [#allocation8]  }
  0x14   : > { %p1495_p4 = por %p109_p0, %p1808_p1  ;;  %s226_s12 = sshll.u32 %s1384_s11, 4  ;;  %s227_s12 = int_to_ptr.vmem [resolvable:$true] %s226_s12 }
  0x15   : > { %p1499_p5 = pnand %p942_p2, %p214_p3  ;;  %s1829_s4 = sld [smem:[#allocation21_spill]] }
  0x16   : > { %s1826_s9 = scalar_select %p1495_p4, 1, 0 }
  0x17   : > { %s1827_s10 = scalar_select %p1499_p5, 1, 0 }
  0x18   : > { %p1042_p6 = pneg %p1499_p5 }
  0x1a   : > { %p1507_p7 = pnand %p1042_p6, %p1808_p1 }
  0x1b   : > { %s1164_s16 = scalar_lea.hbm %s1829_s4, 512 }
  0x1c   : > { %p1165_p8 = scmp.ne.s32.totalorder %s1829_s4, %s1164_s16  ;;  %p1166_p9 = pneg %p1507_p7 }
  0x1d   : > { %p1171_p12 = scmp.lt.u32.totalorder %s1164_s16, %s1829_s4 }
  0x1e   : > { %p1167_p10 = pnand %p1166_p9, %p1165_p8 }
  0x20   : > { %p1168_p11 = pneg %p1167_p10 }
  0x22   : > { %p1173_p13 = pnand %p1171_p12, %p1168_p11 }
  0x24   : > { %1176 = shalt.err (!%p1173_p13)
}
  0x25   : > { %s1177_s21 = scalar_lea.vmem %s227_s12, 512  ;;  %p1185_p6 = scmp.lt.s32.totalorder %s227_s12, %s227_s12 }
  0x26   : > { %p1178_p0 = scmp.ne.s32.totalorder %s227_s12, %s1177_s21  ;;  %p1186_p1 = scmp.lt.s32.totalorder %s1177_s21, %s1177_s21 }
  0x28   : > { %p1180_p2 = pnand %p1178_p0, %p1166_p9  ;;  %p1187_p4 = por %p1186_p1, %p1185_p6 }
  0x2a   : > { %p1181_p3 = pneg %p1180_p2 }
  0x2c   : > { %p1188_p5 = pnand %p1187_p4, %p1181_p3 }
  0x2e   : > { %1191 = shalt.err (!%p1188_p5)
}
  0x2f   : > { %s1811_s11 = smov 128   ;;  %s1812_s14 = smov 8  }
  0x30   : > { %1045 = dma.hbm_to_vmem [thread:$0]  (!%p1507_p7), %s1829_s4, 512, %s227_s12, [#allocation7], %s1811_s11, %s1811_s11, %s1812_s14  }
  0x31   : > { %s941_s17 = sadd.s32 4294967294, %s1382_s7   ;;  %s34_s18 = sadd.s32 1, %s1374_s29 }
  0x32   : > { %s37_s19 = sadd.s32 1, %s1378_s30  ;;  %p35_p1 = scmp.ge.s32.totalorder %s34_s18, 2 }
  0x33   : > { %s44_s20 = sadd.s32 1, %s1362_s26  ;;  %p51_p4 = scmp.ne.s32.totalorder %s1362_s26, %s1358_s25 }
  0x34   : > { %p52_p5 = scmp.eq.s32.totalorder %s1382_s7, 0  ;;  %s1869_s18 = smov (%p35_p1, %s34_s18), 0 }
  0x35   : > { %1830 = sst [smem:[#allocation16_spill]] %s1869_s18  ;;  %s1871_s19 = smov (!%p35_p1, %s37_s19), %s1378_s30 }
  0x36   : > { %p1545_p7 = por %p52_p5, %p51_p4  ;;  %p57_p8 = scmp.ne.s32.totalorder %s1358_s25, %s1354_s24 }
  0x37   : > { %p39_p9 = scmp.ge.s32.totalorder %s1871_s19, 2  ;;  %s93_s13 = ssub.s32 %s1374_s29, %s1869_s18 }
  0x38   : > { %p1832_p10 = scmp.eq.s32.totalorder %s1487_s8, 0  ;;  %p94_p12 = scmp.eq.s32.totalorder %s93_s13, 0 }
  0x39   : > { %s1873_s19 = smov (%p39_p9, %s1871_s19), 0  ;;  %s96_s15 = sadd.s32 1, %s1350_s23 }
  0x3a   : > { %p1558_p11 = por %p1832_p10, %p57_p8  ;;  %1834 = sst [smem:[#allocation17_spill]] %s1873_s19 }
  0x3b   : > { %p103_p13 = scmp.ne.s32.totalorder %s1350_s23, %s1346_s22  ;;  %s41_s16 = ssub.s32 %s1378_s30, %s1873_s19 }
  0x3c   : > { %s1833_s21 = scalar_select %p1558_p11, 1, 0 }
  0x3d   : > { %p201_p0 = scmp.eq.s32.totalorder %s1487_s8, 3  ;;  %p42_p2 = scmp.eq.s32.totalorder %s41_s16, 0 }
  0x3e   : > { %p1572_p3 = por %p103_p13, %p52_p5  ;;  %p207_p1 = scmp.eq.s32.totalorder %s941_s17, 3 }
  0x3f   : > { %s1577_s14 = scalar_select %p94_p12, %s1350_s23, %s96_s15  }
  0x40   : > { %s1580_s13 = scalar_select %p42_p2, %s1362_s26, %s44_s20  }
  0x41   : > { %1836 = sst [smem:[#allocation18_spill]] %s1577_s14  ;;  %p1585_p6 = por %p201_p0, %p51_p4 }
  0x42   : > { %1837 = sst [smem:[#allocation19_spill]] %s1580_s13  ;;  %p1058_p9 = scmp.lt.s32.totalorder %s1382_s7, 4 }
  0x43   : > { %s1838_s4 = scalar_select %p1585_p6, 1, 0 }
  0x44   : > { %s243_s19 = sand.u32 1, %s1362_s26   ;;  %p1594_p10 = por %p207_p1, %p57_p8 }
  0x45   : > { %s945_s18 = sshll.u32 %s243_s19, 3  ;;  %s946_s6 = sshll.u32 %s1378_s30, 7 }
  0x46   : > { %s1839_s16 = scalar_select %p1594_p10, 1, 0 }
  0x47   : > { %s1840_s0 = sld [smem:[#allocation20_spill]]  ;;  %s247_s13 = scalar_lea.vmem [#allocation3], %s945_s18 }
  0x48   : > { %s254_s17 = sshll.u32 %s247_s13, 4  ;;  %p1606_p4 = pnand %p1058_p9, %p1545_p7  ;;  %s1610_s17 = int_to_ptr.vmem [resolvable:$true] %s254_s17 }
  0x49   : > { %p1614_p5 = pnand %p1058_p9, %p1572_p3  ;;  %s244_s15 = scalar_lea.sflag [#allocation4], %s243_s19 }
  0x4a   : > { %p1194_p12 = pneg %p1606_p4 }
  0x4d   : > { %s1602_s20 = scalar_lea.hbm %s1840_s0, %s946_s6  ;;  %s1197_s13 = scalar_lea.hbm %s1840_s0, 256 }
  0x4e   : > { %s1192_s30 = scalar_lea.hbm %s1602_s20, 128  ;;  %p1198_p0 = scmp.lt.u32.totalorder %s1602_s20, %s1840_s0 }
  0x4f   : > { %p1193_p8 = scmp.ne.s32.totalorder %s1602_s20, %s1192_s30  ;;  %p1199_p2 = scmp.lt.u32.totalorder %s1197_s13, %s1192_s30 }
  0x50   : > { %p1201_p1 = scmp.lt.u32.totalorder %s1192_s30, %s1602_s20 }
  0x51   : > { %p1195_p7 = pnand %p1194_p12, %p1193_p8  ;;  %p1200_p3 = por %p1199_p2, %p1198_p0 }
  0x53   : > { %p1196_p13 = pneg %p1195_p7  ;;  %p1202_p9 = por %p1201_p1, %p1200_p3 }
  0x55   : > { %p1203_p10 = pnand %p1202_p9, %p1196_p13 }
  0x57   : > { %1206 = shalt.err (!%p1203_p10)
}
  0x58   : > { %s1207_s19 = scalar_lea.vmem %s1610_s17, 128  ;;  %s1387_s18 = smov [#allocation3]  }
  0x59   : > { %p1208_p8 = scmp.ne.s32.totalorder %s1610_s17, %s1207_s19  ;;  %s1212_s12 = sshll.u32 %s1387_s18, 4  ;;  %s1213_s12 = int_to_ptr.vmem [resolvable:$false] %s1212_s12 }
  0x5a   : > { %s1214_s14 = scalar_lea.vmem %s1213_s12, 256  ;;  %p1215_p11 = scmp.lt.s32.totalorder %s1610_s17, %s1213_s12 }
  0x5b   : > { %p1210_p7 = pnand %p1208_p8, %p1194_p12  ;;  %p1216_p0 = scmp.lt.s32.totalorder %s1214_s14, %s1207_s19 }
  0x5d   : > { %p1211_p6 = pneg %p1210_p7  ;;  %p1217_p2 = por %p1216_p0, %p1215_p11 }
  0x5f   : > { %p1218_p3 = pnand %p1217_p2, %p1211_p6 }
  0x61   : > { %1221 = shalt.err (!%p1218_p3)
}
  0x62   : > { %1049 = dma.hbm_to_vmem [thread:$0]  (!%p1606_p4), %s1602_s20, 128, %s1610_s17, %s244_s15  }
  0x63   : > { %s269_s30 = sand.u32 1, %s1350_s23   ;;  %s969_s13 = sshll.u32 %s1374_s29, 9 }
  0x64   : > { %s947_s11 = sshll.u32 %s269_s30, 5  ;;  %s1649_s19 = scalar_lea.hbm %s1803_s2, %s969_s13 }
  0x65   : > { %s271_s26 = scalar_lea.vmem [#allocation6], %s947_s11  ;;  %s1843_s14 = sand.u32 1, %s1382_s7  }
  0x66   : > { %s278_s12 = sshll.u32 %s271_s26, 4  ;;  %s1655_s0 = scalar_lea.sflag [#allocation7], %s1843_s14  ;;  %s1651_s12 = int_to_ptr.vmem [resolvable:$true] %s278_s12 }
  0x67   : > { %s1222_s20 = scalar_lea.hbm %s1649_s19, 512  ;;  %p1224_p6 = pneg %p1614_p5 }
  0x68   : > { %p1223_p11 = scmp.ne.s32.totalorder %s1649_s19, %s1222_s20  ;;  %s1227_s15 = scalar_lea.hbm %s1803_s2, 1024 }
  0x69   : > { %p1228_p12 = scmp.lt.u32.totalorder %s1649_s19, %s1803_s2  ;;  %p1229_p13 = scmp.lt.u32.totalorder %s1227_s15, %s1222_s20 }
  0x6a   : > { %p1225_p10 = pnand %p1224_p6, %p1223_p11  ;;  %p1231_p9 = scmp.lt.u32.totalorder %s1222_s20, %s1649_s19 }
  0x6b   : > { %p1230_p1 = por %p1229_p13, %p1228_p12 }
  0x6c   : > { %p1226_p4 = pneg %p1225_p10 }
  0x6d   : > { %p1232_p8 = por %p1231_p9, %p1230_p1 }
  0x6f   : > { %p1233_p7 = pnand %p1232_p8, %p1226_p4 }
  0x71   : > { %1236 = shalt.err (!%p1233_p7)
}
  0x72   : > { %s1237_s11 = scalar_lea.vmem %s1651_s12, 512  ;;  %s1388_s18 = smov [#allocation6]  }
  0x73   : > { %p1238_p0 = scmp.ne.s32.totalorder %s1651_s12, %s1237_s11  ;;  %s1242_s26 = sshll.u32 %s1388_s18, 4  ;;  %s1243_s26 = int_to_ptr.vmem [resolvable:$false] %s1242_s26 }
  0x74   : > { %s1244_s14 = scalar_lea.vmem %s1243_s26, 1024  ;;  %p1245_p11 = scmp.lt.s32.totalorder %s1651_s12, %s1243_s26 }
  0x75   : > { %p1240_p2 = pnand %p1238_p0, %p1224_p6  ;;  %p1246_p10 = scmp.lt.s32.totalorder %s1244_s14, %s1237_s11 }
  0x77   : > { %p1241_p3 = pneg %p1240_p2  ;;  %p1247_p12 = por %p1246_p10, %p1245_p11 }
  0x79   : > { %p1248_p13 = pnand %p1247_p12, %p1241_p3 }
  0x7b   : > { %1251 = shalt.err (!%p1248_p13)
}
  0x7c   : > { %s1844_s20 = smov 8   ;;  %s1845_s17 = smov 128  }
  0x7d   : > { %1052 = dma.hbm_to_vmem [thread:$0]  (!%p1614_p5), %s1649_s19, 512, %s1651_s12, %s1655_s0, %s1845_s17, %s1845_s17, %s1844_s20  }
  0x7e   : > { %p1846_p6 = scmp.ne.s32.totalorder %s1827_s10, 0 }
  0x7f   : > { %s1689_s6 = sand.u32 (!%p1846_p6), 1, %s1358_s25   ;;  %p1847_p4 = scmp.ne.s32.totalorder (!%p1846_p6), %s1833_s21, 0 }
  0x80   : > { %296 = sbr.rel (%p1846_p6) target bundleno = 1323 (0x52b), region = 44  ;;  %s951_s15 = sshll.u32 (!%p1846_p6), %s1689_s6, 3 }
  0x81   : > { %s299_s30 = scalar_lea.sflag (!%p1846_p6), [#allocation4], %s1689_s6  ;;  %s302_s5 = scalar_lea.vmem (!%p1846_p6), [#allocation3], %s951_s15 }
  0x87   : > { %1325 = dma.done.wait (%p1847_p4), %s299_s30, 128  }
  0x88   : > { %1327 = vsyncadd (%p1847_p4), %s299_s30, 4294967168  ;;  %s307_s0 = sand.u32 1, %s1487_s8   ;;  %s309_s10 = sand.u32 1, %s1346_s22  }
  0x89   : > { %s952_s19 = sshll.u32 %s309_s10, 5  ;;  %s308_s12 = scalar_lea.sflag [#allocation7], %s307_s0 }
  0x8a   : > { %s311_s13 = scalar_lea.vmem [#allocation6], %s952_s19  ;;  %p1848_p5 = scmp.ne.s32.totalorder %s1826_s9, 0 }
  0x8c   : > { %1329 = dma.done.wait (%p1848_p5), %s308_s12, 512  }
  0x8d   : > { %1331 = vsyncadd (%p1848_p5), %s308_s12, 4294966784  ;;  %p1849_p1 = scmp.eq.s32.totalorder %s1487_s8, 0 }
  0x8f   : > { %1333 = dma.done.wait (%p1849_p1), [#allocation7], 512   ;;  %p1850_p9 = pmov %p1849_p1 }
  0x90   : > { %v1389_v0 = vmov 0.0|0.0   ;;  %vm1390_vm0 = vmmov 0   ;;  %v1391_v1 = vmov 0.0   ;;  %v362_v2 = vld [vmem:[%s311_s13] sm:$0xff]  ;;  %v363_v3 = vld [vmem:[%s311_s13 + $0x8] sm:$0xff]  ;;  %v364_v4 = vld [vmem:[%s311_s13 + $0x10] sm:$0xff]  ;;  %v529_v15 = vlaneseq }
  0x91   : > { %1335 = vsyncadd (%p1850_p9), [#allocation7], 4294966784  ;;  %1020 = vmatprep.subr.bf16.mxu0 %v1389_v0  ;;  %993 = vmatprep.mubr.msk.f32.mxu0 %vm1390_vm0, %v1391_v1  ;;  %v1021_v5 = vpack.c.bf16 %v363_v3, %v362_v2  ;;  %v365_v6 = vld [vmem:[%s311_s13 + $0x18] sm:$0xff]  ;;  %vm373_vm1 = vcmask 261120   ;;  %p358_p8 = scmp.lt.s32.totalorder %s1366_s27, 1  ;;  %s1392_s18 = smov 96  }
  0x92   : > { %996 = vmatprep.subr.mxu1 %v1391_v1  ;;  %998 = vmatprep.mubr.msk.f32.mxu1 %vm1390_vm0, %v1391_v1  ;;  %v1024_v7 = vpack.c.bf16 %v365_v6, %v364_v4  ;;  %v361_v8 = vld [vmem:[%s302_s5] sm:$0xff]  ;;  %s1393_s26 = smov 112   ;;  %vm453_vm2 = vcmask 130048   ;;  %p355_p7 = scmp.lt.s32.totalorder %s1370_s28, 1  ;;  %v530_v18 = vshrl.u32 %v529_v15, 7  ;;  %vm535_vm3 = vcmask 64512  }
  0x93   : > { %1022 = vmatpush3.bf16.msra.mxu0 %v1021_v5  ;;  %s359_s8 = scalar_select %p358_p8, %s1366_s27, 1 }
  0x94   : > { %1023 = vmatprep.subr.bf16.mxu0 %v1389_v0  ;;  %s356_s14 = scalar_select %p355_p7, %s1370_s28, 1  ;;  %v531_v20 = vsub.s32 0, %v530_v18 }
  0x95   : > { %s360_s11 = scalar_lea.vmem %s1804_s3, %s359_s8  ;;  %s960_s5 = sshll.u32 %s1366_s27, 3 }
  0x96   : > { %v955_v9 = vld [vmem:[%s360_s11] ss:$0 sm:$0xff]  ;;  %s357_s30 = scalar_lea.vmem %s1802_s1, %s356_s14  ;;  %s624_s0 = scalar_lea.vmem [#allocation2], %s960_s5 }
  0x97   : > { %1025 = vmatpush3.bf16.msra.mxu0 %v1024_v7  ;;  %v447_v16 = vld [vmem:[%s357_s30] sm:$0x1]  ;;  %s1729_s10 = scalar_lea.vmem [#allocation9], %s951_s15  ;;  %p961_p0 = scmp.ne.s32.totalorder %s1366_s27, 1 }
  0x98   : > { %v448_v17 = vsub.f32 1.0, %v447_v16  ;;  %v636_v36 = vld [vmem:[#allocation8 + $0x10] sm:$0xff] (!%p961_p0)  ;;  %v637_v37 = vld [vmem:[#allocation8 + $0x18] sm:$0xff] (!%p961_p0)  ;;  %v631_v38 = vld [vmem:[#allocation8] sm:$0xff] (!%p961_p0)  ;;  %v1394_v39 = vmov (!%p961_p0), 0.0|0.0   ;;  %vm1395_vm4 = vmmov (!%p961_p0), 0  }
  0x99   : > { %1026 = vmatprep.subr.bf16.mxu0 (!%p961_p0), %v1394_v39  ;;  %v1027_v40 = vpack.c.bf16 (!%p961_p0), %v637_v37, %v636_v36  ;;  %v632_v41 = vld [vmem:[#allocation8 + $0x8] sm:$0xff] (!%p961_p0)  ;;  %v1396_v43 = vmov (!%p961_p0), 0.0   ;;  %s1851_s19 = sld [smem:[#allocation22_spill]] (!%p961_p0) }
  0x9a   : > { %994 = vmatmul.mubr.msk.f32.vlgmr.msra.gmra.mrb[0].mxu0 %vm373_vm1, %v361_v8  ;;  %v449_v19 = vmul.f32 1000000.0, %v448_v17  ;;  %v1030_v42 = vpack.c.bf16 (!%p961_p0), %v632_v41, %v631_v38 }
  0x9b   : > { %1010 = vmatprep.mubr.msk.f32.mxu0 (!%p961_p0), %vm1395_vm4, %v1396_v43  ;;  %1028 = vmatpush3.bf16.msra.mxu0 (!%p961_p0), %v1027_v40 }
  0x9c   : > { %v532_v21 = vrot.slane %v449_v19, %v531_v20 }
  0x9f   : > { %v964_v48 = vld [vmem:[%s1851_s19] ss:$0 sm:$0xff] (!%p961_p0) }
 0x16d   : > { %v443_v10 = vpop.f32.mrb[0].mxu0 }
 0x16e   : > { %v444_v11 = vadd.f32 %v955_v9, %v443_v10  ;;  %v995_v12 = vpop.f32.mrb[1].mxu0 }
 0x170   : > { %545 = vrot.lane.b32.xlu1 %v444_v11, %s1392_s18  ;;  %451 = vrot.lane.b32.xlu0 %v444_v11, %s1393_s26 }
 0x1e2   : > { %v452_v13 = vpop.permute.xlu0 %451  ;;  %v546_v14 = vpop.permute.xlu1 %545 }
 0x1e3   : > { %997 = vmatpush3.xpose.msk.msra.mxu1 %vm453_vm2, %v452_v13 }
 0x1e4   : > { %1001 = vmatprep.subr.mxu1 %v1391_v1 }
 0x1e6   : > { %999 = vmatmul.mubr.msk.f32.vlgmr.msra.gmra.mrb[0].mxu1 %vm453_vm2, %v444_v11 }
 0x1e7   : > { %1002 = vmatpush3.msra.mxu1 %v546_v14  ;;  %1003 = vmatprep.mubr.msk.f32.mxu1 %vm1390_vm0, %v1391_v1 }
 0x1e8   : > { %1029 = vmatprep.subr.bf16.mxu1 (!%p961_p0), %v1394_v39 }
 0x2b9   : > { %v524_v22 = vpop.f32.mrb[0].mxu1 }
 0x2ba   : > { %v534_v23 = vsub.f32 %v524_v22, %v532_v21  ;;  %v1000_v24 = vpop.f32.mrb[1].mxu1 }
 0x2bc   : > { %v536_v25 = vsel %vm535_vm3, %v534_v23, -inf }
 0x2bd   : > { %537 = vmax.xlane.f32.xlu0 %v536_v25 }
 0x34a   : > { %v538_v26 = vpop.xlane.xlu0 %537 }
 0x34b   : > { %v539_v27 = vsub.f32 %v534_v23, %v538_v26 }
 0x34d   : > { %v540_v28 = vmul.f32 1.442695, %v539_v27 }
 0x34f   : > { %1160 = vpow2.f32 %v540_v28 }
 0x359   : > { %v1161_v29 = vpop.eup %1160 }
 0x35a   : > { %1004 = vmatmul.mubr.msk.f32.vlgmr.msra.gmra.mrb[2].mxu1 %vm535_vm3, %v1161_v29  ;;  %v542_v30 = vsel %vm535_vm3, %v1161_v29, 0.0 }
 0x35b   : > { %543 = vadd.xlane.f32.xlu1 %v542_v30  ;;  %1017 = vmatprep.mubr.msk.f32.mxu1 (!%p961_p0), %vm1395_vm4, %v1396_v43 }
 0x35c   : > { %1031 = vmatpush3.bf16.msra.mxu1 (!%p961_p0), %v1030_v42 }
 0x3e8   : > { %v544_v31 = vpop.xlane.xlu1 %543 }
 0x3e9   : > { %1162 = vrcp.f32 %v544_v31 }
 0x3f3   : > { %v1163_v32 = vpop.eup %1162 }
 0x42a   : > { %629 = sbr.rel (%p961_p0) target bundleno = 1297 (0x511), region = 60 }
 0x42d   : > { %v617_v33 = vpop.f32.mrb[2].mxu1 }
 0x42e   : > { %v622_v34 = vmul.f32 %v1163_v32, %v617_v33  ;;  %v1005_v35 = vpop.f32.mrb[3].mxu1 }
 0x430   : > { %625 = vst.msk [vmem:[%s624_s0] sm:$0xff] %vm453_vm2, %v622_v34 }
 0x437   : > { %v634_v44 = vld [vmem:[#allocation2 + $0x8] sm:$0xff]  ;;  %v630_v45 = vld [vmem:[#allocation2] sm:$0xff] }
 0x438   : > { %1011 = vmatmul.mubr.msk.f32.vlgmr.msra.gmra.mrb[0].mxu0 %vm453_vm2, %v634_v44  ;;  %1018 = vmatmul.mubr.msk.f32.vlgmr.msra.gmra.mrb[0].mxu1 %vm453_vm2, %v630_v45 }
 0x50b   : > { %v707_v46 = vpop.f32.mrb[0].mxu0  ;;  %v780_v47 = vpop.f32.mrb[0].mxu1 }
 0x50c   : > { %v1012_v49 = vpop.f32.mrb[1].mxu0  ;;  %v781_v50 = vadd.f32 %v780_v47, %v707_v46  ;;  %v1019_v51 = vpop.f32.mrb[1].mxu1 }
 0x50e   : > { %v791_v52 = vadd.f32 %v964_v48, %v781_v50 }
 0x510   : > { %792 = vst.msk [vmem:[%s1729_s10] sm:$0xff] %vm373_vm1, %v791_v52 }
 0x511 PF: > { %s966_s12 = sshll.u32 %s1370_s28, 7  ;;  %s1852_s9 = sld [smem:[#allocation23_spill]] }
 0x512   : > { %s807_s11 = sshll.u32 %s1729_s10, 4  ;;  %s794_s18 = scalar_lea.sflag [#allocation5], %s1689_s6  ;;  %s808_s11 = int_to_ptr.vmem [resolvable:$true] %s807_s11 }
 0x513   : > { %s1252_s26 = scalar_lea.vmem %s808_s11, 128  ;;  %p1853_p3 = scmp.ne.s32.totalorder %s1838_s4, 0 }
 0x514   : > { %p1253_p2 = scmp.ne.s32.totalorder %s808_s11, %s1252_s26  ;;  %s1397_s14 = smov [#allocation9]  }
 0x515   : > { %s1256_s20 = sshll.u32 %s1397_s14, 4  ;;  %s1257_s20 = int_to_ptr.vmem [resolvable:$false] %s1256_s20 }
 0x516   : > { %p1254_p11 = pnand %p1253_p2, %p1853_p3  ;;  %s1258_s17 = scalar_lea.vmem %s1257_s20, 256 }
 0x517   : > { %s1743_s21 = scalar_lea.hbm %s1852_s9, %s966_s12  ;;  %p1259_p12 = scmp.lt.s32.totalorder %s808_s11, %s1257_s20 }
 0x518   : > { %p1255_p10 = pneg %p1254_p11  ;;  %p1260_p13 = scmp.lt.s32.totalorder %s1258_s17, %s1252_s26 }
 0x51a   : > { %p1261_p6 = por %p1260_p13, %p1259_p12 }
 0x51c   : > { %p1262_p4 = pnand %p1261_p6, %p1255_p10 }
 0x51e   : > { %1265 = shalt.err (!%p1262_p4)
}
 0x51f   : > { %s1266_s28 = scalar_lea.hbm %s1743_s21, 128  ;;  %s1270_s5 = scalar_lea.hbm %s1852_s9, 256 }
 0x520   : > { %p1267_p5 = scmp.ne.s32.totalorder %s1743_s21, %s1266_s28  ;;  %p1271_p8 = scmp.lt.u32.totalorder %s1743_s21, %s1852_s9 }
 0x521   : > { %p1272_p7 = scmp.lt.u32.totalorder %s1270_s5, %s1266_s28  ;;  %p1274_p2 = scmp.lt.u32.totalorder %s1266_s28, %s1743_s21 }
 0x522   : > { %p1268_p1 = pnand %p1267_p5, %p1853_p3 }
 0x523   : > { %p1273_p0 = por %p1272_p7, %p1271_p8 }
 0x524   : > { %p1269_p9 = pneg %p1268_p1 }
 0x525   : > { %p1275_p11 = por %p1274_p2, %p1273_p0 }
 0x527   : > { %p1276_p10 = pnand %p1275_p11, %p1269_p9 }
 0x529   : > { %1279 = shalt.err (!%p1276_p10)
}
 0x52a   : > { %1040 = dma.vmem_to_hbm [thread:$0]  (%p1853_p3), %s808_s11, 128, %s1743_s21, %s794_s18  }
 0x52b PF: > { %p1060_p12 = scmp.ge.s32.totalorder %s1382_s7, 2  ;;  %s819_s27 = sand.u32 1, %s1354_s24  }
 0x52c   : > { %p1854_p13 = scmp.ne.s32.totalorder %s1839_s16, 0  ;;  %s820_s15 = scalar_lea.sflag [#allocation5], %s819_s27 }
 0x52e   : > { %p1054_p6 = pnand %p1060_p12, %p1854_p13 }
 0x530   : > { %1337 = dma.done.wait (!%p1054_p6), %s820_s15, 128  }
 0x531   : > { %1339 = vsyncadd (!%p1054_p6), %s820_s15, 4294967168  ;;  %s25_s7 = sadd.s32 1, %s1382_s7   ;;  %s1855_s19 = sld [smem:[#allocation18_spill]] }
 0x532   : > { %p22_p4 = scmp.ge.s32.totalorder %s25_s7, 6   ;;  %s1856_s4 = sld [smem:[#allocation14_spill]] }
 0x533   : > { %s1857_s26 = sld [smem:[#allocation19_spill]]  ;;  %s1858_s28 = sld [smem:[#allocation15_spill]] }
 0x534   : > { %s1859_s12 = sld [smem:[#allocation16_spill]]  ;;  %s1860_s30 = sld [smem:[#allocation17_spill]] }
 0x535   : > { %s1861_s21 = smov %s1346_s22  ;;  %s1862_s22 = smov %s1350_s23 }
 0x536   : > { %s1864_s24 = smov %s1358_s25  ;;  %s1866_s27 = smov %s1374_s29 }
 0x537   : > { %s1863_s23 = smov %s1855_s19  ;;  %24 = sbr.rel (!%p22_p4) target bundleno = 16 (0x10), region = 119 }
 0x538   : > { %s1865_s25 = smov %s1856_s4 }
 0x53a   : > { %s1867_s29 = smov %s1859_s12 }
 0x53e   :  { %825 = vsyncpa [#allocation4], 1 }
 0x53f   :  { %827 = vsyncpa [#allocation4 + $0x1], 1 }
 0x540   :  { %828 = vsyncpa [#allocation7], 1 }
 0x541   :  { %830 = vsyncpa [#allocation7 + $0x1], 1 }
 0x542   :  { %831 = vsyncpa [#allocation5], 1 }
 0x543   :  { %833 = vsyncpa [#allocation5 + $0x1], 1 }

</bundles_post_ra>
